<compile_context>
chip_gen: v7x
topology: tpu7x:2x2x1
jax: 0.10.0
libtpu: 0.0.40
codegen_flags: <defaults>
</compile_context>

<pallas_src>
import functools

import jax
import jax.numpy as jnp
from jax.experimental import pallas as pl
from jax.experimental.pallas import tpu as pltpu

_LANES = 128
_ROW_ALIGN = 64        # covers f32/bf16/int8 min tiles + 8-way reduction split
_MAX_TILE_ROWS = 8192  # 8192 x 128 x 4B = 4 MiB per f32 input block


def _round_up(x, m):
    return ((x + m - 1) // m) * m


def _pow_static(x, gamma):
    """x ** gamma for a static Python gamma.

    Integer gamma -> explicit multiplies (4-wide VALU, keeps EUP free for
    log).  Returns None when the factor is identically 1 (gamma == 0),
    matching torch semantics (0 ** 0 == 1).
    """
    g = float(gamma)
    if g.is_integer() and g >= 0:
        g = int(g)
        if g == 0:
            return None
        result = None
        base = x
        while g:
            if g & 1:
                result = base if result is None else result * base
            g >>= 1
            if g:
                base = base * base
        return result
    # Non-integer gamma: generic pow (EUP).  Matches torch except for
    # inf/NaN corner cases already noted for the original module.
    return x ** gamma


def _focal_loss_kernel(pred_ref, tgt_ref, out_ref, *, gamma, total_rows):
    tile_rows, lanes = pred_ref.shape

    # Native-dtype loads; upcast in-register (free relative to the DMA).
    pred = pred_ref[...].astype(jnp.float32)
    tgt = tgt_ref[...].astype(jnp.float32)

    pt = jnp.where(tgt == 1.0, pred, 1.0 - pred)

    # Mask the ragged tail rows of a partial last block (static decision:
    # only emitted when the block size does not divide the row count).
    # Must happen BEFORE log(): garbage rows get pt = 1 -> loss exactly 0.
    if total_rows % tile_rows != 0:
        row_start = pl.program_id(0) * tile_rows
        row_ids = jax.lax.broadcasted_iota(jnp.int32, (tile_rows, lanes), 0)
        pt = jnp.where(row_ids + row_start < total_rows, pt, 1.0)

    log_pt = jnp.log(pt)
    focal = _pow_static(1.0 - pt, gamma)
    loss = -log_pt if focal is None else -(focal * log_pt)

    # Per-block (8, 128) partial sum via 8 independent accumulation chains
    # (pure VPU adds, latency-hidden), then a 7-add merge.  No XLU cross-lane
    # reduce, no loop-carried scalar, no SMEM round-trip.
    partial8 = loss.reshape(tile_rows // 64, 8, 8, lanes).sum(axis=0)
    out_ref[...] = partial8.sum(axis=0)


def focal_loss(prediction, target, gamma=0, size_average=False):
    """Pallas TPU implementation of FocalLoss.forward."""
    assert prediction.shape == target.shape
    # Flatten only (free for contiguous arrays); keep native dtypes.
    pred = prediction.reshape(-1)
    tgt = target.reshape(-1)
    n = pred.shape[0]

    # Only pad when n is not a multiple of 128 (rare; at most 127 elements
    # of "safe" values: pred = 1 / target = 1 so pt = 1 -> exactly zero loss).
    lane_pad = (-n) % _LANES
    if lane_pad:
        pred = jnp.concatenate([pred, jnp.ones((lane_pad,), pred.dtype)])
        tgt = jnp.concatenate([tgt, jnp.ones((lane_pad,), tgt.dtype)])

    rows = pred.shape[0] // _LANES
    pred2d = pred.reshape(rows, _LANES)
    tgt2d = tgt.reshape(rows, _LANES)

    # Choose block size: as big as possible (<= 4 MiB f32 per input block),
    # but keep >= 2 blocks (even count) so the "parallel" axis can shard
    # across both v7x TensorCores.  Ragged last block handled in-kernel.
    want_blocks = max(2, pl.cdiv(rows, _MAX_TILE_ROWS))
    if want_blocks > 1 and want_blocks % 2:
        want_blocks += 1
    tile_rows = min(_MAX_TILE_ROWS,
                    _round_up(pl.cdiv(rows, want_blocks), _ROW_ALIGN))
    num_blocks = pl.cdiv(rows, tile_rows)

    kernel = functools.partial(_focal_loss_kernel, gamma=gamma, total_rows=rows)

    partials = pl.pallas_call(
        kernel,
        out_shape=jax.ShapeDtypeStruct((num_blocks * 8, _LANES), jnp.float32),
        grid_spec=pltpu.PrefetchScalarGridSpec(
            num_scalar_prefetch=0,
            grid=(num_blocks,),
            in_specs=[
                pl.BlockSpec((tile_rows, _LANES), lambda i: (i, 0)),
                pl.BlockSpec((tile_rows, _LANES), lambda i: (i, 0)),
            ],
            out_specs=pl.BlockSpec((8, _LANES), lambda i: (i, 0)),
        ),
        compiler_params=pltpu.CompilerParams(
            dimension_semantics=("parallel",),   # no carried state -> both TCs
            vmem_limit_bytes=32 * 1024 * 1024,   # safe on v5e/v6e/v7x
        ),
    )(pred2d, tgt2d)

    total = jnp.sum(partials, dtype=jnp.float32)
    if size_average:
        return total / jnp.float32(n)
    return total


def _focal_loss_ref(prediction, target, gamma=0, size_average=False):
    pred = prediction.astype(jnp.float32)
    tgt = target.astype(jnp.float32)
    pt = jnp.where(tgt == 1.0, pred, 1.0 - pred)
    loss = -1.0 * (1.0 - pt) ** gamma * jnp.log(pt)
    return loss.mean() if size_average else loss.sum()


if __name__ == "__main__":
    key = jax.random.PRNGKey(0)
    k1, k2, k3, k4, k5, k6 = jax.random.split(key, 6)

    # Small detection-heatmap style inputs: NCHW (B, C, H, W), f32.
    B, C, H, W = 2, 4, 16, 16
    prediction = jax.random.uniform(
        k1, (B, C, H, W), jnp.float32, minval=0.05, maxval=0.95)
    target = (jax.random.uniform(k2, (B, C, H, W)) > 0.9).astype(jnp.float32)

    # gamma = 0 (module default) and gamma = 2 (focal term active).
    for gamma in (0, 2):
        out = jax.block_until_ready(focal_loss(prediction, target, gamma=gamma))
        ref = _focal_loss_ref(prediction, target, gamma=gamma)
        assert jnp.allclose(out, ref, rtol=1e-5, atol=1e-4), (gamma, out, ref)

    # size_average=True path.
    out_m = jax.block_until_ready(
        focal_loss(prediction, target, gamma=2, size_average=True))
    ref_m = _focal_loss_ref(prediction, target, gamma=2, size_average=True)
    assert jnp.allclose(out_m, ref_m, rtol=1e-5, atol=1e-5), (out_m, ref_m)

    # Native bf16 prediction + bf16 target (no wrapper astype; in-kernel upcast).
    pred_bf = prediction.astype(jnp.bfloat16)
    tgt_bf = target.astype(jnp.bfloat16)
    out_bf = jax.block_until_ready(focal_loss(pred_bf, tgt_bf, gamma=2))
    ref_bf = _focal_loss_ref(pred_bf, tgt_bf, gamma=2)
    assert jnp.allclose(out_bf, ref_bf, rtol=1e-4, atol=1e-2), (out_bf, ref_bf)

    # Ragged row count (rows % tile != 0) exercises the in-kernel tail mask.
    p2 = jax.random.uniform(
        k3, (2, 3, 16, 16), jnp.float32, minval=0.05, maxval=0.95)
    t2 = (jax.random.uniform(k4, (2, 3, 16, 16)) > 0.9).astype(jnp.float32)
    out2 = jax.block_until_ready(focal_loss(p2, t2, gamma=2))
    ref2 = _focal_loss_ref(p2, t2, gamma=2)
    assert jnp.allclose(out2, ref2, rtol=1e-5, atol=1e-4), (out2, ref2)

    # Ragged flattened size (n % 128 != 0) exercises the lane-pad path.
    p4 = jax.random.uniform(
        k5, (2, 3, 11, 13), jnp.float32, minval=0.05, maxval=0.95)
    t4 = (jax.random.uniform(k6, (2, 3, 11, 13)) > 0.9).astype(jnp.float32)
    out4 = jax.block_until_ready(focal_loss(p4, t4, gamma=2))
    ref4 = _focal_loss_ref(p4, t4, gamma=2)
    assert jnp.allclose(out4, ref4, rtol=1e-5, atol=1e-4), (out4, ref4)

    # Multi-block grid (parallel axis, >= 2 even blocks) with bf16 inputs.
    kp, kt = jax.random.split(k3)
    p3 = jax.random.uniform(
        kp, (2, 16, 128, 128), jnp.float32, minval=0.05, maxval=0.95
    ).astype(jnp.bfloat16)
    t3 = (jax.random.uniform(kt, (2, 16, 128, 128)) > 0.95).astype(jnp.bfloat16)
    out3 = jax.block_until_ready(focal_loss(p3, t3, gamma=2))
    ref3 = _focal_loss_ref(p3, t3, gamma=2)
    assert jnp.allclose(out3, ref3, rtol=1e-4, atol=1e-2), (out3, ref3)

    print("KERNEL_OK")
</pallas_src>

<mosaic_0001>
module attributes {stable_mosaic.version = 11 : i64} {
  func.func @_focal_loss_kernel(%arg0: i32, %arg1: memref<64x128xf32, #tpu.memory_space<vmem>>, %arg2: memref<64x128xf32, #tpu.memory_space<vmem>>, %arg3: memref<8x128xf32, #tpu.memory_space<vmem>>) attributes {dimension_semantics = [#tpu.dimension_semantics<parallel>], iteration_bounds = array<i64: 1>, scalar_prefetch = 0 : i64, scratch_operands = 0 : i64, tpu.core_type = #tpu.core_type<tc>, window_params = [{transform_indices = @transform_0, window_bounds = array<i64: 64, 128>}, {transform_indices = @transform_1, window_bounds = array<i64: 64, 128>}, {transform_indices = @transform_2, window_bounds = array<i64: 8, 128>}]} {
    %c0 = arith.constant 0 : index
    %c0_0 = arith.constant 0 : index
    %0 = vector.load %arg1[%c0, %c0_0] : memref<64x128xf32, #tpu.memory_space<vmem>>, vector<64x128xf32>
    %c0_1 = arith.constant 0 : index
    %c0_2 = arith.constant 0 : index
    %1 = vector.load %arg2[%c0_1, %c0_2] : memref<64x128xf32, #tpu.memory_space<vmem>>, vector<64x128xf32>
    %cst = arith.constant 1.000000e+00 : f32
    %2 = vector.broadcast %cst : f32 to vector<64x128xf32>
    %3 = arith.cmpf oeq, %1, %2 : vector<64x128xf32>
    %cst_3 = arith.constant 1.000000e+00 : f32
    %4 = vector.broadcast %cst_3 : f32 to vector<64x128xf32>
    %5 = arith.subf %4, %0 : vector<64x128xf32>
    %6 = arith.select %3, %0, %5 : vector<64x128xi1>, vector<64x128xf32>
    %c64_i32 = arith.constant 64 : i32
    %7 = arith.muli %arg0, %c64_i32 : i32
    %8 = tpu.iota {dimensions = array<i32: 0>} : vector<64x128xi32>
    %9 = vector.broadcast %7 : i32 to vector<64x128xi32>
    %10 = arith.addi %8, %9 : vector<64x128xi32>
    %c16_i32 = arith.constant 16 : i32
    %11 = vector.broadcast %c16_i32 : i32 to vector<64x128xi32>
    %12 = arith.cmpi slt, %10, %11 : vector<64x128xi32>
    %cst_4 = arith.constant 1.000000e+00 : f32
    %13 = vector.broadcast %cst_4 : f32 to vector<64x128xf32>
    %14 = arith.select %12, %6, %13 : vector<64x128xi1>, vector<64x128xf32>
    %15 = math.log %14 : vector<64x128xf32>
    %cst_5 = arith.constant 0.000000e+00 : f32
    %16 = vector.broadcast %cst_5 : f32 to vector<64x128xf32>
    %17 = arith.subf %16, %15 : vector<64x128xf32>
    %18 = vector.shape_cast %17 : vector<64x128xf32> to vector<1x8x8x128xf32>
    %cst_6 = arith.constant dense<0.000000e+00> : vector<8x8x128xf32>
    %19 = vector.multi_reduction <add>, %18, %cst_6 [0] : vector<1x8x8x128xf32> to vector<8x8x128xf32>
    %cst_7 = arith.constant dense<0.000000e+00> : vector<8x128xf32>
    %20 = vector.multi_reduction <add>, %19, %cst_7 [0] : vector<8x8x128xf32> to vector<8x128xf32>
    %c0_8 = arith.constant 0 : index
    %c0_9 = arith.constant 0 : index
    %21 = vector.load %arg3[%c0_8, %c0_9] : memref<8x128xf32, #tpu.memory_space<vmem>>, vector<8x128xf32>
    tpu.vector_store %arg3[%c0_8, %c0_9], %20 {strides = array<i32>} : memref<8x128xf32, #tpu.memory_space<vmem>>, vector<8x128xf32>,
    return
  }
  func.func @transform_0(%arg0: i32) -> (i32, i32) {
    %c0_i32 = arith.constant 0 : i32
    %c0_i32_0 = arith.constant 0 : i32
    return %arg0, %c0_i32 : i32, i32
  }
  func.func @transform_1(%arg0: i32) -> (i32, i32) {
    %c0_i32 = arith.constant 0 : i32
    %c0_i32_0 = arith.constant 0 : i32
    return %arg0, %c0_i32 : i32, i32
  }
  func.func @transform_2(%arg0: i32) -> (i32, i32) {
    %c0_i32 = arith.constant 0 : i32
    %c0_i32_0 = arith.constant 0 : i32
    return %arg0, %c0_i32 : i32, i32
  }
}

</mosaic_0001>

<bundles_post_ra>
// kernel: tpu_custom_call.1
= control target key start
LH: loop header
LB: loop body
LE: loop exit
PB: predicated region body
PF: predicated region fallthrough
CT: control target
= control target key end

     0   :  { %7 = vsyncpa [#allocation3], 0  ;;  %s308_s0 = inlined_call_operand.hbm [shape: f32[16,128], index: 0, kind: input, shape index: {}]   ;;  %s309_s1 = inlined_call_operand.hbm [shape: f32[16,128], index: 1, kind: input, shape index: {}]   ;;  %s310_s2 = inlined_call_operand.hbm [shape: f32[8,128], index: 2, kind: output, shape index: {}]  }
   0x1   :  { %8 = vsyncpa [#allocation6], 0 }
   0x2   :  { %9 = vsyncpa [#allocation4], 0 }
   0x3   :  { %14 = vsyncadd [#allocation3], 768  ;;  %s252_s9 = smov [#allocation2]   ;;  %s180_s13 = scalar_lea.hbm %s308_s0, 256 }
   0x4   :  { %s15_s10 = sshll.u32 %s252_s9, 4  ;;  %p181_p0 = scmp.ne.s32.totalorder %s308_s0, %s180_s13  ;;  %s16_s10 = int_to_ptr.vmem [resolvable:$true] %s15_s10 }
   0x5   :  { %p184_p1 = scmp.lt.u32.totalorder %s180_s13, %s308_s0 }
   0x7   :  { %p186_p2 = pnand %p184_p1, %p181_p0 }
   0x9   :  { %189 = shalt.err (!%p186_p2)
}
   0xa   :  { %s190_s18 = scalar_lea.vmem %s16_s10, 256  ;;  %s194_s19 = scalar_lea.vmem %s16_s10, 1024 }
   0xb   :  { %p191_p3 = scmp.ne.s32.totalorder %s16_s10, %s190_s18  ;;  %p195_p4 = scmp.lt.s32.totalorder %s16_s10, %s16_s10 }
   0xc   :  { %p196_p5 = scmp.lt.s32.totalorder %s194_s19, %s190_s18 }
   0xe   :  { %p197_p6 = por %p196_p5, %p195_p4 }
  0x10   :  { %p198_p7 = pnand %p197_p6, %p191_p3 }
  0x12   :  { %201 = shalt.err (!%p198_p7)
}
  0x13   :  { %s253_s20 = smov 128   ;;  %s254_s21 = smov 8  }
  0x14   :  { %21 = dma.hbm_to_vmem [thread:$0]  %s308_s0, 256, %s16_s10, [#allocation3], %s253_s20, %s253_s20, %s254_s21  }
  0x15   :  { %26 = vsyncadd [#allocation6], 768  ;;  %s255_s24 = smov [#allocation5]   ;;  %s202_s28 = scalar_lea.hbm %s309_s1, 256 }
  0x16   :  { %s27_s25 = sshll.u32 %s255_s24, 4  ;;  %p203_p8 = scmp.ne.s32.totalorder %s309_s1, %s202_s28  ;;  %s28_s25 = int_to_ptr.vmem [resolvable:$true] %s27_s25 }
  0x17   :  { %p206_p9 = scmp.lt.u32.totalorder %s202_s28, %s309_s1 }
  0x19   :  { %p208_p10 = pnand %p206_p9, %p203_p8 }
  0x1b   :  { %211 = shalt.err (!%p208_p10)
}
  0x1c   :  { %s212_s5 = scalar_lea.vmem %s28_s25, 256  ;;  %s216_s0 = scalar_lea.vmem %s28_s25, 1024 }
  0x1d   :  { %p213_p11 = scmp.ne.s32.totalorder %s28_s25, %s212_s5  ;;  %p217_p12 = scmp.lt.s32.totalorder %s28_s25, %s28_s25 }
  0x1e   :  { %p218_p13 = scmp.lt.s32.totalorder %s216_s0, %s212_s5 }
  0x20   :  { %p219_p0 = por %p218_p13, %p217_p12 }
  0x22   :  { %p220_p1 = pnand %p219_p0, %p213_p11 }
  0x24   :  { %223 = shalt.err (!%p220_p1)
}
  0x25   :  { %33 = dma.hbm_to_vmem [thread:$0]  %s309_s1, 256, %s28_s25, [#allocation6], %s253_s20, %s253_s20, %s254_s21  }
  0x26   :  { %246 = dma.done.wait [#allocation3], 1024  }
  0x27   :  { %247 = vsyncadd [#allocation3], 4294966272 }
  0x28   :  { %248 = dma.done.wait [#allocation6], 1024  }
  0x29   :  { %249 = vsyncadd [#allocation6], 4294966272  ;;  %v40_v0 = vld [vmem:[#allocation2] sm:$0xff]  ;;  %v41_v1 = vld [vmem:[#allocation2 + $0x8] sm:$0xff]  ;;  %s256_s1 = smov [#allocation7]  }
  0x2a   :  { %v48_v2 = vld [vmem:[#allocation5] sm:$0xff]  ;;  %v49_v3 = vld [vmem:[#allocation5 + $0x8] sm:$0xff]  ;;  %v64_v4 = vsub.f32 1.0, %v40_v0  ;;  %v65_v5 = vsub.f32 1.0, %v41_v1  ;;  %s161_s8 = sshll.u32 %s256_s1, 4  ;;  %s162_s8 = int_to_ptr.vmem [resolvable:$true] %s161_s8 }
  0x2b   :  { %vm56_vm0 = vcmp.eq.f32.partialorder %v48_v2, 1.0  ;;  %vm57_vm1 = vcmp.eq.f32.partialorder %v49_v3, 1.0  ;;  %s224_s9 = scalar_lea.vmem %s162_s8, 128  ;;  %p229_p3 = scmp.lt.s32.totalorder %s162_s8, %s162_s8 }
  0x2c   :  { %v72_v6 = vsel %vm56_vm0, %v40_v0, %v64_v4  ;;  %v73_v7 = vsel %vm57_vm1, %v41_v1, %v65_v5  ;;  %p225_p2 = scmp.ne.s32.totalorder %s162_s8, %s224_s9  ;;  %p230_p4 = scmp.lt.s32.totalorder %s224_s9, %s224_s9 }
  0x2d   :  { %176 = vlog2.f32 %v72_v6 }
  0x2e   :  { %178 = vlog2.f32 %v73_v7  ;;  %p231_p5 = por %p230_p4, %p229_p3 }
  0x30   :  { %p232_p6 = pnand %p231_p5, %p225_p2 }
  0x37   :  { %v177_v8 = vpop.eup %176 }
  0x38   :  { %v179_v9 = vpop.eup %178  ;;  %v116_v10 = vmul.f32 0.6931472, %v177_v8 }
  0x39   :  { %v118_v11 = vmul.f32 0.6931472, %v179_v9 }
  0x3a   :  { %v131_v12 = vsub.f32 0.0, %v116_v10 }
  0x3b   :  { %v132_v13 = vsub.f32 0.0, %v118_v11 }
  0x3d   :  { %v147_v14 = vadd.f32 %v132_v13, %v131_v12 }
  0x3f   :  { %154 = vst [vmem:[#allocation7] sm:$0xff] %v147_v14 }
  0x40   :  { %235 = shalt.err (!%p232_p6)
}
  0x41   :  { %s236_s12 = scalar_lea.hbm %s310_s2, 128 }
  0x42   :  { %p237_p7 = scmp.ne.s32.totalorder %s310_s2, %s236_s12  ;;  %p240_p8 = scmp.lt.u32.totalorder %s236_s12, %s310_s2 }
  0x44   :  { %p242_p9 = pnand %p240_p8, %p237_p7 }
  0x46   :  { %245 = shalt.err (!%p242_p9)
}
  0x47   :  { %164 = dma.vmem_to_hbm [thread:$0]  %s162_s8, 128, %s310_s2, [#allocation4]  }
  0x48   :  { %250 = dma.done.wait [#allocation4], 128  }
  0x49   :  { %251 = vsyncadd [#allocation4], 4294967168 }
  0x4a   :  { %168 = vsyncpa [#allocation3], 1 }
  0x4b   :  { %169 = vsyncpa [#allocation6], 1 }
  0x4c   :  { %170 = vsyncpa [#allocation4], 1 }

</bundles_post_ra>
